<compile_context>
chip_gen: v7x
topology: tpu7x:2x2x1
jax: 0.10.0
libtpu: 0.0.40
codegen_flags: <defaults>
</compile_context>

<pallas_src>
import functools

import jax
import jax.numpy as jnp
import jax.scipy as jsp
from jax.experimental import pallas as pl
from jax.experimental.pallas import tpu as pltpu

HID = 32          # hidden width of the synthetic backbones
N_BACKBONES = 4
FEAT = 4          # per-backbone logits fed to the head (Linear(4, 1000))


def _round_up(x, m):
    return ((x + m - 1) // m) * m


def _pick_hw_tile(hw):
    """Largest lane-aligned (multiple-of-128) tile <= 512 that divides HW.

    512 lanes * N * C * 4 B stays far below the default scoped VMEM on all of
    v5e (16 MiB) / v6e (32 MiB) / v7x (32 MiB scoped, 64 MiB physical) while
    keeping the streamed DMA close to the HBM roofline.  If HW is not a
    multiple of 128 fall back to the full extent (still a legal block).
    """
    if hw % 128 != 0:
        return hw
    for t in (512, 384, 256, 128):
        if hw % t == 0:
            return t
    return hw


# -----------------------------------------------------------------------------
# Fused kernel: streamed pool  +  4 backbones  +  ensemble head.
#
# Grid: (HW // hw_tile,)  -- "arbitrary": it carries the pooled-sum accumulator
# (a parallel split would race on the scratch; for large N the right megacore
# lever is an extra batch-tile axis marked "parallel", not this one).
#
#   img_ref : (N, C, hw_tile)         streamed spatial tile
#   wf_ref  : (C, 4*HID)              4 backbone first-linears, concat on HID
#   bf_ref  : (1, 4*HID)
#   wo_ref  : (4*HID, 4*FEAT)         block-diagonal per-backbone projection
#   bo_ref  : (1, 4*FEAT)
#   w12_ref : (FEAT, 512)             (w1 @ w2) folded, zero-padded 500->512
#   b12_ref : (1, 512)
#   w3_ref  : (512, 256)              zero-padded 500x250 -> 512x256
#   b3_ref  : (1, 256)
#   w4_ref  : (256, 128)              zero-padded 250x1 -> 256x128 (lane dense)
#   b4_ref  : (1, 128)
#   out_ref : (4*N, 128)              column 0 is the real output
#   pool_acc: (N, C) f32 VMEM scratch (summed pool, scaled once at finalize)
# -----------------------------------------------------------------------------
def fused_kernel(img_ref, wf_ref, bf_ref, wo_ref, bo_ref,
                 w12_ref, b12_ref, w3_ref, b3_ref, w4_ref, b4_ref,
                 out_ref, pool_acc, *, inv_hw):
    t = pl.program_id(0)
    n_hw = pl.num_programs(0)

    @pl.when(t == 0)
    def _init():
        pool_acc[...] = jnp.zeros_like(pool_acc)

    # Accumulate partial spatial sums; the single 1/(H*W) scale happens once
    # at finalize (accumulate-then-scale instead of per-step mean/divide).
    pool_acc[...] += jnp.sum(img_ref[...], axis=2)                    # (N, C)

    @pl.when(t == n_hw - 1)
    def _finalize():
        pooled = pool_acc[...] * inv_hw                               # (N, C)

        # ---- all four backbones in one MXU pass (128-lane-dense output) ----
        h = jnp.dot(pooled, wf_ref[...],
                    preferred_element_type=jnp.float32) + bf_ref[...]  # (N,128)
        h = jnp.maximum(h, 0.0)
        feats = jnp.dot(h, wo_ref[...],
                        preferred_element_type=jnp.float32) + bo_ref[...]  # (N,16)

        # (N, 4*FEAT) -> (4*N, FEAT): row-block m == backbone m, i.e. the
        # flattened torch.stack([...]) layout the head expects.
        x = jnp.concatenate(
            [feats[:, FEAT * m:FEAT * (m + 1)] for m in range(N_BACKBONES)],
            axis=0)                                                    # (4N, 4)

        # ---- ensemble head (W12 pre-folded, lane-padded dims) --------------
        h1 = jnp.dot(x, w12_ref[...],
                     preferred_element_type=jnp.float32) + b12_ref[...]
        h1 = jnp.maximum(h1, 0.0)                                      # (4N,512)
        h2 = jnp.dot(h1, w3_ref[...],
                     preferred_element_type=jnp.float32) + b3_ref[...]
        h2 = jnp.maximum(h2, 0.0)                                      # (4N,256)
        out_ref[...] = jnp.dot(h2, w4_ref[...],
                               preferred_element_type=jnp.float32) + b4_ref[...]


def init_params(key, C):
    """Deterministic PyTorch-Linear-style uniform(-1/sqrt(fan_in), 1/sqrt(fan_in))."""
    keys = jax.random.split(key, 16)

    def lin(k, fan_in, shape):
        bound = 1.0 / jnp.sqrt(jnp.float32(fan_in))
        return jax.random.uniform(k, shape, jnp.float32, -bound, bound)

    return {
        # stacked per-backbone weights (leading axis = backbone index)
        "wf": lin(keys[0], C, (N_BACKBONES, C, HID)),
        "bf": lin(keys[1], C, (N_BACKBONES, HID)),
        "wo": lin(keys[2], HID, (N_BACKBONES, HID, FEAT)),
        "bo": lin(keys[3], HID, (N_BACKBONES, FEAT)),
        # ensemble head: Linear(4,1000), Linear(1000,500), ReLU,
        #                Linear(500,250), ReLU, Linear(250,1)
        "w1": lin(keys[4], 4, (4, 1000)),
        "b1": lin(keys[5], 4, (1, 1000)),
        "w2": lin(keys[6], 1000, (1000, 500)),
        "b2": lin(keys[7], 1000, (1, 500)),
        "w3": lin(keys[8], 500, (500, 250)),
        "b3": lin(keys[9], 500, (1, 250)),
        "w4": lin(keys[10], 250, (250, 1)),
        "b4": lin(keys[11], 250, (1, 1)),
    }


@jax.jit
def ensemble_forward(image, params):
    # image: (N, C, H, W) NCHW float32
    N, C, H, W = image.shape
    HW = H * W
    img = image.reshape(N, C, HW)

    hw_tile = _pick_hw_tile(HW)
    n_tiles = HW // hw_tile

    # ---- one-time weight preprocessing (tiny jnp ops, fused by XLA) --------
    # Four backbones concatenated along the hidden axis -> one matmul.
    wf_cat = jnp.concatenate([params["wf"][m] for m in range(N_BACKBONES)],
                             axis=1)                                  # (C, 4*HID)
    bf_cat = params["bf"].reshape(1, N_BACKBONES * HID)
    wo_bd = jsp.linalg.block_diag(
        *[params["wo"][m] for m in range(N_BACKBONES)])               # (4*HID, 16)
    bo_cat = params["bo"].reshape(1, N_BACKBONES * FEAT)

    # Fold the ReLU-less Linear(4,1000)->Linear(1000,500) pair (exact up to FP
    # reassociation) and zero-pad head dims to lane multiples of 128.
    w12 = params["w1"] @ params["w2"]                                 # (4, 500)
    b12 = params["b1"] @ params["w2"] + params["b2"]                  # (1, 500)
    d1 = _round_up(500, 128)   # 512
    d2 = _round_up(250, 128)   # 256
    d3 = 128                   # lane-dense final output, real value in col 0
    w12p = jnp.pad(w12, ((0, 0), (0, d1 - 500)))
    b12p = jnp.pad(b12, ((0, 0), (0, d1 - 500)))
    w3p = jnp.pad(params["w3"], ((0, d1 - 500), (0, d2 - 250)))
    b3p = jnp.pad(params["b3"], ((0, 0), (0, d2 - 250)))
    w4p = jnp.pad(params["w4"], ((0, d2 - 250), (0, d3 - 1)))
    b4p = jnp.pad(params["b4"], ((0, 0), (0, d3 - 1)))

    kernel = functools.partial(fused_kernel, inv_hw=1.0 / float(HW))

    out = pl.pallas_call(
        kernel,
        out_shape=jax.ShapeDtypeStruct((N_BACKBONES * N, d3), jnp.float32),
        grid=(n_tiles,),
        in_specs=[
            # streamed image tiles (lane axis = spatial, multiple of 128)
            pl.BlockSpec((N, C, hw_tile), lambda t: (0, 0, t)),
            # VMEM-resident weights: constant block index -> no re-DMA per step
            pl.BlockSpec(wf_cat.shape, lambda t: (0, 0)),
            pl.BlockSpec(bf_cat.shape, lambda t: (0, 0)),
            pl.BlockSpec(wo_bd.shape, lambda t: (0, 0)),
            pl.BlockSpec(bo_cat.shape, lambda t: (0, 0)),
            pl.BlockSpec(w12p.shape, lambda t: (0, 0)),
            pl.BlockSpec(b12p.shape, lambda t: (0, 0)),
            pl.BlockSpec(w3p.shape, lambda t: (0, 0)),
            pl.BlockSpec(b3p.shape, lambda t: (0, 0)),
            pl.BlockSpec(w4p.shape, lambda t: (0, 0)),
            pl.BlockSpec(b4p.shape, lambda t: (0, 0)),
        ],
        out_specs=pl.BlockSpec((N_BACKBONES * N, d3), lambda t: (0, 0)),
        scratch_shapes=[pltpu.VMEM((N, C), jnp.float32)],
        compiler_params=pltpu.CompilerParams(
            dimension_semantics=("arbitrary",)),
    )(img, wf_cat, bf_cat, wo_bd, bo_cat, w12p, b12p, w3p, b3p, w4p, b4p)

    # strip lane padding and restore the torch.stack layout (4, N, 1)
    return out[:, :1].reshape(N_BACKBONES, N, 1)


def ensemble_forward_ref(image, params):
    """Pure-JAX reference (unfused, unfolded) for numerical checking."""
    N, C, H, W = image.shape
    pooled = image.reshape(N, C, H * W).mean(axis=2)               # (N, C)
    feats = []
    for m in range(N_BACKBONES):
        h = jnp.maximum(pooled @ params["wf"][m] + params["bf"][m], 0.0)
        feats.append(h @ params["wo"][m] + params["bo"][m])
    x = jnp.stack(feats)                                           # (4, N, 4)
    h = x @ params["w1"] + params["b1"][0]
    h = h @ params["w2"] + params["b2"][0]
    h = jnp.maximum(h, 0.0)
    h = h @ params["w3"] + params["b3"][0]
    h = jnp.maximum(h, 0.0)
    return h @ params["w4"] + params["b4"][0]                      # (4, N, 1)


if __name__ == "__main__":
    key = jax.random.PRNGKey(0)
    k_img, k_par = jax.random.split(key)

    C = 4
    params = init_params(k_par, C=C)

    # (2,4,16,16): single spatial tile; (2,4,32,32): 2 streamed tiles, exercises
    # the cross-step pooled-sum accumulation path.
    for shape in ((2, C, 16, 16), (2, C, 32, 32)):
        image = jax.random.normal(k_img, shape, dtype=jnp.float32)
        out = jax.block_until_ready(ensemble_forward(image, params))
        ref = ensemble_forward_ref(image, params)
        assert out.shape == (N_BACKBONES, shape[0], 1), out.shape
        assert jnp.allclose(out, ref, rtol=1e-4, atol=1e-4), \
            f"mismatch vs reference at shape {shape}"

    print("KERNEL_OK")
</pallas_src>

<mosaic_0001>
module attributes {stable_mosaic.version = 11 : i64} {
  func.func @fused_kernel(%arg0: i32, %arg1: memref<2x4x256xf32, #tpu.memory_space<vmem>>, %arg2: memref<4x128xf32, #tpu.memory_space<vmem>>, %arg3: memref<1x128xf32, #tpu.memory_space<vmem>>, %arg4: memref<128x16xf32, #tpu.memory_space<vmem>>, %arg5: memref<1x16xf32, #tpu.memory_space<vmem>>, %arg6: memref<4x512xf32, #tpu.memory_space<vmem>>, %arg7: memref<1x512xf32, #tpu.memory_space<vmem>>, %arg8: memref<512x256xf32, #tpu.memory_space<vmem>>, %arg9: memref<1x256xf32, #tpu.memory_space<vmem>>, %arg10: memref<256x128xf32, #tpu.memory_space<vmem>>, %arg11: memref<1x128xf32, #tpu.memory_space<vmem>>, %arg12: memref<8x128xf32, #tpu.memory_space<vmem>>, %arg13: memref<2x4xf32, #tpu.memory_space<vmem>>) attributes {dimension_semantics = [#tpu.dimension_semantics<arbitrary>], iteration_bounds = array<i64: 1>, scalar_prefetch = 0 : i64, scratch_operands = 1 : i64, tpu.core_type = #tpu.core_type<tc>, window_params = [{transform_indices = @transform_0, window_bounds = array<i64: 2, 4, 256>}, {pipeline_mode = #tpu.pipeline_mode<synchronous>, transform_indices = @transform_1, window_bounds = array<i64: 4, 128>}, {pipeline_mode = #tpu.pipeline_mode<synchronous>, transform_indices = @transform_2, window_bounds = array<i64: 1, 128>}, {pipeline_mode = #tpu.pipeline_mode<synchronous>, transform_indices = @transform_3, window_bounds = array<i64: 128, 16>}, {pipeline_mode = #tpu.pipeline_mode<synchronous>, transform_indices = @transform_4, window_bounds = array<i64: 1, 16>}, {pipeline_mode = #tpu.pipeline_mode<synchronous>, transform_indices = @transform_5, window_bounds = array<i64: 4, 512>}, {pipeline_mode = #tpu.pipeline_mode<synchronous>, transform_indices = @transform_6, window_bounds = array<i64: 1, 512>}, {pipeline_mode = #tpu.pipeline_mode<synchronous>, transform_indices = @transform_7, window_bounds = array<i64: 512, 256>}, {pipeline_mode = #tpu.pipeline_mode<synchronous>, transform_indices = @transform_8, window_bounds = array<i64: 1, 256>}, {pipeline_mode = #tpu.pipeline_mode<synchronous>, transform_indices = @transform_9, window_bounds = array<i64: 256, 128>}, {pipeline_mode = #tpu.pipeline_mode<synchronous>, transform_indices = @transform_10, window_bounds = array<i64: 1, 128>}, {pipeline_mode = #tpu.pipeline_mode<synchronous>, transform_indices = @transform_11, window_bounds = array<i64: 8, 128>}]} {
    %c0_i32 = arith.constant 0 : i32
    %0 = arith.cmpi eq, %arg0, %c0_i32 : i32
    %1 = arith.extui %0 : i1 to i32
    %c0_i32_0 = arith.constant 0 : i32
    %2 = arith.cmpi ne, %1, %c0_i32_0 : i32
    scf.if %2 {
      %cst_9 = arith.constant 0.000000e+00 : f32
      %11 = vector.broadcast %cst_9 : f32 to vector<2x4xf32>
      %c0_10 = arith.constant 0 : index
      %c0_11 = arith.constant 0 : index
      %12 = vector.load %arg13[%c0_10, %c0_11] : memref<2x4xf32, #tpu.memory_space<vmem>>, vector<2x4xf32>
      tpu.vector_store %arg13[%c0_10, %c0_11], %11 {strides = array<i32>} : memref<2x4xf32, #tpu.memory_space<vmem>>, vector<2x4xf32>,
    } else {
    }
    %c0 = arith.constant 0 : index
    %c0_1 = arith.constant 0 : index
    %3 = vector.load %arg13[%c0, %c0_1] : memref<2x4xf32, #tpu.memory_space<vmem>>, vector<2x4xf32>
    %c0_2 = arith.constant 0 : index
    %c0_3 = arith.constant 0 : index
    %c0_4 = arith.constant 0 : index
    %4 = vector.load %arg1[%c0_2, %c0_3, %c0_4] : memref<2x4x256xf32, #tpu.memory_space<vmem>>, vector<2x4x256xf32>
    %cst = arith.constant dense<0.000000e+00> : vector<2x4xf32>
    %5 = vector.multi_reduction <add>, %4, %cst [2] : vector<2x4x256xf32> to vector<2x4xf32>
    %6 = arith.addf %3, %5 : vector<2x4xf32>
    %c0_5 = arith.constant 0 : index
    %c0_6 = arith.constant 0 : index
    %7 = vector.load %arg13[%c0_5, %c0_6] : memref<2x4xf32, #tpu.memory_space<vmem>>, vector<2x4xf32>
    tpu.vector_store %arg13[%c0_5, %c0_6], %6 {strides = array<i32>} : memref<2x4xf32, #tpu.memory_space<vmem>>, vector<2x4xf32>,
    %c0_i32_7 = arith.constant 0 : i32
    %8 = arith.cmpi eq, %arg0, %c0_i32_7 : i32
    %9 = arith.extui %8 : i1 to i32
    %c0_i32_8 = arith.constant 0 : i32
    %10 = arith.cmpi ne, %9, %c0_i32_8 : i32
    scf.if %10 {
      %c0_9 = arith.constant 0 : index
      %c0_10 = arith.constant 0 : index
      %11 = vector.load %arg13[%c0_9, %c0_10] : memref<2x4xf32, #tpu.memory_space<vmem>>, vector<2x4xf32>
      %cst_11 = arith.constant 3.906250e-03 : f32
      %12 = vector.broadcast %cst_11 : f32 to vector<2x4xf32>
      %13 = arith.mulf %11, %12 : vector<2x4xf32>
      %c0_12 = arith.constant 0 : index
      %c0_13 = arith.constant 0 : index
      %14 = vector.load %arg2[%c0_12, %c0_13] : memref<4x128xf32, #tpu.memory_space<vmem>>, vector<4x128xf32>
      %cst_14 = arith.constant dense<0.000000e+00> : vector<2x128xf32>
      %15 = tpu.matmul %13, %14, %cst_14 {dimension_numbers = #tpu.dot_dimension_numbers<[1], [0], [0], [1], [0, 0, 1, 1], [], []>} : vector<2x4xf32>, vector<4x128xf32>, vector<2x128xf32> -> vector<2x128xf32>
      %c0_15 = arith.constant 0 : index
      %c0_16 = arith.constant 0 : index
      %16 = vector.load %arg3[%c0_15, %c0_16] : memref<1x128xf32, #tpu.memory_space<vmem>>, vector<1x128xf32>
      %17 = vector.broadcast %16 : vector<1x128xf32> to vector<2x128xf32>
      %18 = arith.addf %15, %17 : vector<2x128xf32>
      %cst_17 = arith.constant 0.000000e+00 : f32
      %19 = vector.broadcast %cst_17 : f32 to vector<2x128xf32>
      %20 = arith.maximumf %18, %19 : vector<2x128xf32>
      %c0_18 = arith.constant 0 : index
      %c0_19 = arith.constant 0 : index
      %21 = vector.load %arg4[%c0_18, %c0_19] : memref<128x16xf32, #tpu.memory_space<vmem>>, vector<128x16xf32>
      %cst_20 = arith.constant dense<0.000000e+00> : vector<2x16xf32>
      %22 = tpu.matmul %20, %21, %cst_20 {dimension_numbers = #tpu.dot_dimension_numbers<[1], [0], [0], [1], [0, 0, 1, 1], [], []>} : vector<2x128xf32>, vector<128x16xf32>, vector<2x16xf32> -> vector<2x16xf32>
      %c0_21 = arith.constant 0 : index
      %c0_22 = arith.constant 0 : index
      %23 = vector.load %arg5[%c0_21, %c0_22] : memref<1x16xf32, #tpu.memory_space<vmem>>, vector<1x16xf32>
      %24 = vector.broadcast %23 : vector<1x16xf32> to vector<2x16xf32>
      %25 = arith.addf %22, %24 : vector<2x16xf32>
      %26 = vector.extract_strided_slice %25 {offsets = [0, 0], sizes = [2, 4], strides = [1, 1]} : vector<2x16xf32> to vector<2x4xf32>
      %27 = vector.extract_strided_slice %25 {offsets = [0, 4], sizes = [2, 4], strides = [1, 1]} : vector<2x16xf32> to vector<2x4xf32>
      %28 = vector.extract_strided_slice %25 {offsets = [0, 8], sizes = [2, 4], strides = [1, 1]} : vector<2x16xf32> to vector<2x4xf32>
      %29 = vector.extract_strided_slice %25 {offsets = [0, 12], sizes = [2, 4], strides = [1, 1]} : vector<2x16xf32> to vector<2x4xf32>
      %30 = tpu.concatenate %26, %27, %28, %29 in 0 : vector<2x4xf32>, vector<2x4xf32>, vector<2x4xf32>, vector<2x4xf32> -> vector<8x4xf32>
      %c0_23 = arith.constant 0 : index
      %c0_24 = arith.constant 0 : index
      %31 = vector.load %arg6[%c0_23, %c0_24] : memref<4x512xf32, #tpu.memory_space<vmem>>, vector<4x512xf32>
      %cst_25 = arith.constant dense<0.000000e+00> : vector<8x512xf32>
      %32 = tpu.matmul %30, %31, %cst_25 {dimension_numbers = #tpu.dot_dimension_numbers<[1], [0], [0], [1], [0, 0, 1, 1], [], []>} : vector<8x4xf32>, vector<4x512xf32>, vector<8x512xf32> -> vector<8x512xf32>
      %c0_26 = arith.constant 0 : index
      %c0_27 = arith.constant 0 : index
      %33 = vector.load %arg7[%c0_26, %c0_27] : memref<1x512xf32, #tpu.memory_space<vmem>>, vector<1x512xf32>
      %34 = vector.broadcast %33 : vector<1x512xf32> to vector<8x512xf32>
      %35 = arith.addf %32, %34 : vector<8x512xf32>
      %cst_28 = arith.constant 0.000000e+00 : f32
      %36 = vector.broadcast %cst_28 : f32 to vector<8x512xf32>
      %37 = arith.maximumf %35, %36 : vector<8x512xf32>
      %c0_29 = arith.constant 0 : index
      %c0_30 = arith.constant 0 : index
      %38 = vector.load %arg8[%c0_29, %c0_30] : memref<512x256xf32, #tpu.memory_space<vmem>>, vector<512x256xf32>
      %cst_31 = arith.constant dense<0.000000e+00> : vector<8x256xf32>
      %39 = tpu.matmul %37, %38, %cst_31 {dimension_numbers = #tpu.dot_dimension_numbers<[1], [0], [0], [1], [0, 0, 1, 1], [], []>} : vector<8x512xf32>, vector<512x256xf32>, vector<8x256xf32> -> vector<8x256xf32>
      %c0_32 = arith.constant 0 : index
      %c0_33 = arith.constant 0 : index
      %40 = vector.load %arg9[%c0_32, %c0_33] : memref<1x256xf32, #tpu.memory_space<vmem>>, vector<1x256xf32>
      %41 = vector.broadcast %40 : vector<1x256xf32> to vector<8x256xf32>
      %42 = arith.addf %39, %41 : vector<8x256xf32>
      %cst_34 = arith.constant 0.000000e+00 : f32
      %43 = vector.broadcast %cst_34 : f32 to vector<8x256xf32>
      %44 = arith.maximumf %42, %43 : vector<8x256xf32>
      %c0_35 = arith.constant 0 : index
      %c0_36 = arith.constant 0 : index
      %45 = vector.load %arg10[%c0_35, %c0_36] : memref<256x128xf32, #tpu.memory_space<vmem>>, vector<256x128xf32>
      %cst_37 = arith.constant dense<0.000000e+00> : vector<8x128xf32>
      %46 = tpu.matmul %44, %45, %cst_37 {dimension_numbers = #tpu.dot_dimension_numbers<[1], [0], [0], [1], [0, 0, 1, 1], [], []>} : vector<8x256xf32>, vector<256x128xf32>, vector<8x128xf32> -> vector<8x128xf32>
      %c0_38 = arith.constant 0 : index
      %c0_39 = arith.constant 0 : index
      %47 = vector.load %arg11[%c0_38, %c0_39] : memref<1x128xf32, #tpu.memory_space<vmem>>, vector<1x128xf32>
      %48 = vector.broadcast %47 : vector<1x128xf32> to vector<8x128xf32>
      %49 = arith.addf %46, %48 : vector<8x128xf32>
      %c0_40 = arith.constant 0 : index
      %c0_41 = arith.constant 0 : index
      %50 = vector.load %arg12[%c0_40, %c0_41] : memref<8x128xf32, #tpu.memory_space<vmem>>, vector<8x128xf32>
      tpu.vector_store %arg12[%c0_40, %c0_41], %49 {strides = array<i32>} : memref<8x128xf32, #tpu.memory_space<vmem>>, vector<8x128xf32>,
    } else {
    }
    return
  }
  func.func @transform_0(%arg0: i32) -> (i32, i32, i32) {
    %c0_i32 = arith.constant 0 : i32
    %c0_i32_0 = arith.constant 0 : i32
    %c0_i32_1 = arith.constant 0 : i32
    return %c0_i32, %c0_i32_0, %arg0 : i32, i32, i32
  }
  func.func @transform_1(%arg0: i32) -> (i32, i32) {
    %c0_i32 = arith.constant 0 : i32
    %c0_i32_0 = arith.constant 0 : i32
    %c0_i32_1 = arith.constant 0 : i32
    return %c0_i32, %c0_i32_0 : i32, i32
  }
  func.func @transform_2(%arg0: i32) -> (i32, i32) {
    %c0_i32 = arith.constant 0 : i32
    %c0_i32_0 = arith.constant 0 : i32
    %c0_i32_1 = arith.constant 0 : i32
    return %c0_i32, %c0_i32_0 : i32, i32
  }
  func.func @transform_3(%arg0: i32) -> (i32, i32) {
    %c0_i32 = arith.constant 0 : i32
    %c0_i32_0 = arith.constant 0 : i32
    %c0_i32_1 = arith.constant 0 : i32
    return %c0_i32, %c0_i32_0 : i32, i32
  }
  func.func @transform_4(%arg0: i32) -> (i32, i32) {
    %c0_i32 = arith.constant 0 : i32
    %c0_i32_0 = arith.constant 0 : i32
    %c0_i32_1 = arith.constant 0 : i32
    return %c0_i32, %c0_i32_0 : i32, i32
  }
  func.func @transform_5(%arg0: i32) -> (i32, i32) {
    %c0_i32 = arith.constant 0 : i32
    %c0_i32_0 = arith.constant 0 : i32
    %c0_i32_1 = arith.constant 0 : i32
    return %c0_i32, %c0_i32_0 : i32, i32
  }
  func.func @transform_6(%arg0: i32) -> (i32, i32) {
    %c0_i32 = arith.constant 0 : i32
    %c0_i32_0 = arith.constant 0 : i32
    %c0_i32_1 = arith.constant 0 : i32
    return %c0_i32, %c0_i32_0 : i32, i32
  }
  func.func @transform_7(%arg0: i32) -> (i32, i32) {
    %c0_i32 = arith.constant 0 : i32
    %c0_i32_0 = arith.constant 0 : i32
    %c0_i32_1 = arith.constant 0 : i32
    return %c0_i32, %c0_i32_0 : i32, i32
  }
  func.func @transform_8(%arg0: i32) -> (i32, i32) {
    %c0_i32 = arith.constant 0 : i32
    %c0_i32_0 = arith.constant 0 : i32
    %c0_i32_1 = arith.constant 0 : i32
    return %c0_i32, %c0_i32_0 : i32, i32
  }
  func.func @transform_9(%arg0: i32) -> (i32, i32) {
    %c0_i32 = arith.constant 0 : i32
    %c0_i32_0 = arith.constant 0 : i32
    %c0_i32_1 = arith.constant 0 : i32
    return %c0_i32, %c0_i32_0 : i32, i32
  }
  func.func @transform_10(%arg0: i32) -> (i32, i32) {
    %c0_i32 = arith.constant 0 : i32
    %c0_i32_0 = arith.constant 0 : i32
    %c0_i32_1 = arith.constant 0 : i32
    return %c0_i32, %c0_i32_0 : i32, i32
  }
  func.func @transform_11(%arg0: i32) -> (i32, i32) {
    %c0_i32 = arith.constant 0 : i32
    %c0_i32_0 = arith.constant 0 : i32
    %c0_i32_1 = arith.constant 0 : i32
    return %c0_i32, %c0_i32_0 : i32, i32
  }
}

</mosaic_0001>

<bundles_post_ra>
// kernel: ensemble_forward.1
= control target key start
LH: loop header
LB: loop body
LE: loop exit
PB: predicated region body
PF: predicated region fallthrough
CT: control target
= control target key end

     0   :  { %vm53_vm0 = vcmask 1043456   ;;  %vm42_vm1 = vcmask 25600   ;;  %v1170_v10 = vmov 0.0   ;;  %vm1171_vm2 = vmmov 0   ;;  %s1174_s24 = smov 124   ;;  %s1175_s25 = smov 120   ;;  %s1835_s0 = inlined_call_operand.vmem [shape: f32[2,4,256], index: 0, kind: input, shape index: {}]   ;;  %s1836_s1 = inlined_call_operand.vmem [shape: f32[4,128], index: 1, kind: input, shape index: {}]   ;;  %s1837_s3 = inlined_call_operand.vmem [shape: f32[128,16], index: 3, kind: input, shape index: {}]   ;;  %s1838_s2 = inlined_call_operand.vmem [shape: f32[1,128], index: 2, kind: input, shape index: {}]   ;;  %s1839_s5 = inlined_call_operand.vmem [shape: f32[4,512], index: 5, kind: input, shape index: {}]   ;;  %s1840_s4 = inlined_call_operand.vmem [shape: f32[1,16], index: 4, kind: input, shape index: {}]   ;;  %s1841_s7 = inlined_call_operand.vmem [shape: f32[512,256], index: 7, kind: input, shape index: {}]   ;;  %s1842_s9 = inlined_call_operand.vmem [shape: f32[256,128], index: 9, kind: input, shape index: {}]   ;;  %s1843_s6 = inlined_call_operand.vmem [shape: f32[1,512], index: 6, kind: input, shape index: {}]   ;;  %s1844_s8 = inlined_call_operand.vmem [shape: f32[1,256], index: 8, kind: input, shape index: {}]   ;;  %s1845_s10 = inlined_call_operand.vmem [shape: f32[1,128], index: 10, kind: input, shape index: {}]   ;;  %s1846_s11 = inlined_call_operand.vmem [shape: f32[8,128], index: 11, kind: output, shape index: {}]  }
   0x1   :  { %v45_v0 = vld [vmem:[%s1835_s0] sm:$0xff]  ;;  %v46_v1 = vld [vmem:[%s1835_s0 + $0x8] sm:$0xff]  ;;  %43 = vst.msk [vmem:[#allocation2] sm:$0x3] %vm42_vm1, %v1170_v10  ;;  %932 = vmatprep.subr.mxu0 %v1170_v10  ;;  %387 = vmatprep.mubr.f32.mxu1 %v1170_v10  ;;  %v1172_v12 = vmov 0.0|0.0   ;;  %v66_v13 = vlaneseq  ;;  %vm76_vm3 = vcmask 1041409  }
   0x2   :  { %v49_v2 = vcombine.high %v45_v0, %v45_v0  ;;  %v54_v3 = vsel %vm53_vm0, %v45_v0, 0.0  ;;  %v50_v4 = vcombine.high %v46_v1, %v46_v1  ;;  %v59_v6 = vsel %vm53_vm0, %v46_v1, 0.0  ;;  %v87_v11 = vld [vmem:[%s1836_s1] sm:$0xf]  ;;  %934 = vmatprep.mubr.msk.f32.mxu0 %vm1171_vm2, %v1170_v10  ;;  %v174_v25 = vld [vmem:[%s1837_s3 + $0x8] sm:$0xff]  ;;  %v175_v29 = vld [vmem:[%s1837_s3 + $0x10] sm:$0xff] }
   0x3   :  { %933 = vmatpush3.msk.msra.mxu0 %vm53_vm0, %v87_v11  ;;  %v67_v14 = vand.u32 127, %v66_v13  ;;  %v1256_v15 = vshrl.u32 %v66_v13, 7  ;;  %v173_v24 = vld [vmem:[%s1837_s3] sm:$0xff]  ;;  %vm95_vm4 = vcmask 31744   ;;  %v176_v30 = vld [vmem:[%s1837_s3 + $0x18] sm:$0xff]  ;;  %v178_v33 = vld [vmem:[%s1837_s3 + $0x28] sm:$0xff] }
   0x4   :  { %v55_v5 = vsel %vm53_vm0, %v49_v2, 0.0  ;;  %v60_v7 = vsel %vm53_vm0, %v50_v4, 0.0  ;;  %972 = vmatprep.subr.bf16.mxu0 %v1172_v12  ;;  %v973_v27 = vpack.c.bf16 %v174_v25, %v173_v24  ;;  %v976_v31 = vpack.c.bf16 %v176_v30, %v175_v29  ;;  %v177_v32 = vld [vmem:[%s1837_s3 + $0x20] sm:$0xff]  ;;  %v179_v35 = vld [vmem:[%s1837_s3 + $0x30] sm:$0xff]  ;;  %v180_v36 = vld [vmem:[%s1837_s3 + $0x38] sm:$0xff] }
   0x5   :  { %v56_v8 = vadd.f32 %v55_v5, %v54_v3  ;;  %v61_v9 = vadd.f32 %v60_v7, %v59_v6  ;;  %v70_v17 = vsub.s32 %v67_v14, %v1256_v15  ;;  %v979_v34 = vpack.c.bf16 %v178_v33, %v177_v32  ;;  %v181_v38 = vld [vmem:[%s1837_s3 + $0x40] sm:$0xff]  ;;  %v182_v39 = vld [vmem:[%s1837_s3 + $0x48] sm:$0xff]  ;;  %v183_v41 = vld [vmem:[%s1837_s3 + $0x50] sm:$0xff] }
   0x6   :  { %v982_v37 = vpack.c.bf16 %v180_v36, %v179_v35  ;;  %v985_v40 = vpack.c.bf16 %v182_v39, %v181_v38  ;;  %v184_v42 = vld [vmem:[%s1837_s3 + $0x58] sm:$0xff]  ;;  %v185_v44 = vld [vmem:[%s1837_s3 + $0x60] sm:$0xff]  ;;  %v186_v45 = vld [vmem:[%s1837_s3 + $0x68] sm:$0xff]  ;;  %vm279_vm5 = vcmask 1041408   ;;  %vm282_vm6 = vcmask 1045504  }
   0x7   :  { %57 = vadd.xlane.f32.xlu0 %v56_v8  ;;  %v988_v43 = vpack.c.bf16 %v184_v42, %v183_v41  ;;  %v991_v46 = vpack.c.bf16 %v186_v45, %v185_v44  ;;  %v187_v47 = vld [vmem:[%s1837_s3 + $0x70] sm:$0xff]  ;;  %v188_v48 = vld [vmem:[%s1837_s3 + $0x78] sm:$0xff]  ;;  %v867_v50 = vld [vmem:[%s1838_s2] ss:$0 sm:$0xff] }
   0x8   :  { %v44_v20 = vld [vmem:[#allocation2] sm:$0x3]  ;;  %v994_v49 = vpack.c.bf16 %v188_v48, %v187_v47  ;;  %v285_v55 = vld [vmem:[%s1839_s5 + $0x8] sm:$0xff]  ;;  %v472_v61 = vld [vmem:[%s1841_s7 + $0x18] sm:$0xff] }
   0x9   :  { %v284_v56 = vld [vmem:[%s1839_s5] sm:$0xff]  ;;  %v311_v57 = vcombine.high %v285_v55, %v285_v55  ;;  %v470_v60 = vld [vmem:[%s1841_s7 + $0x8] sm:$0xff]  ;;  %v536_v1 = vld [vmem:[%s1841_s7 + $0x218] sm:$0xff] }
   0xa   :  { %v310_v58 = vcombine.high %v284_v56, %v284_v56  ;;  %v870_v59 = vld [vmem:[%s1840_s4] ss:$0 sm:$0xff]  ;;  %v534_v62 = vld [vmem:[%s1841_s7 + $0x208] sm:$0xff]  ;;  %v996_v0 = vpack.c.bf16 %v472_v61, %v470_v60  ;;  %s1173_s4 = smov 116   ;;  %v476_v14 = vld [vmem:[%s1841_s7 + $0x38] sm:$0xff] }
   0xb   :  { %62 = vadd.xlane.f32.xlu0 %v61_v9  ;;  %v1060_v4 = vpack.c.bf16 %v536_v1, %v534_v62  ;;  %v469_v9 = vld [vmem:[%s1841_s7] sm:$0xff]  ;;  %v474_v13 = vld [vmem:[%s1841_s7 + $0x28] sm:$0xff]  ;;  %v539_v29 = vld [vmem:[%s1841_s7 + $0x230] sm:$0xff] }
   0xc   :  { %871 = vmatprep.subr.msk.mxu1 %vm53_vm0, %v310_v58  ;;  %v533_v11 = vld [vmem:[%s1841_s7 + $0x200] sm:$0xff]  ;;  %v478_v30 = vld [vmem:[%s1841_s7 + $0x48] sm:$0xff]  ;;  %v480_v32 = vld [vmem:[%s1841_s7 + $0x58] sm:$0xff] }
   0xd   :  { %872 = vmatpush1.msk.msra.mxu1 %vm53_vm0, %v284_v56  ;;  %v542_v33 = vld [vmem:[%s1841_s7 + $0x248] sm:$0xff]  ;;  %v479_v38 = vld [vmem:[%s1841_s7 + $0x50] sm:$0xff]  ;;  %v1004_v39 = vpack.c.bf16 %v480_v32, %v478_v30  ;;  %v541_v41 = vld [vmem:[%s1841_s7 + $0x240] sm:$0xff] }
   0xe   :  { %997 = vmatprep.subr.bf16.mxu1 %v996_v0  ;;  %v543_v42 = vld [vmem:[%s1841_s7 + $0x250] sm:$0xff]  ;;  %v484_v44 = vld [vmem:[%s1841_s7 + $0x78] sm:$0xff]  ;;  %v546_v45 = vld [vmem:[%s1841_s7 + $0x268] sm:$0xff] }
   0xf   :  { %v1070_v48 = vpack.c.bf16 %v543_v42, %v541_v41  ;;  %v488_v56 = vld [vmem:[%s1841_s7 + $0x98] sm:$0xff]  ;;  %v485_v61 = vld [vmem:[%s1841_s7 + $0x80] sm:$0xff]  ;;  %v487_v62 = vld [vmem:[%s1841_s7 + $0x90] sm:$0xff] }
  0x10   :  { %v552_v58 = vld [vmem:[%s1841_s7 + $0x298] sm:$0xff]  ;;  %v549_v1 = vld [vmem:[%s1841_s7 + $0x280] sm:$0xff]  ;;  %v562_v30 = vld [vmem:[%s1841_s7 + $0x2e8] sm:$0xff] }
  0x11   :  { %v504_v41 = vld [vmem:[%s1841_s7 + $0x118] sm:$0xff]  ;;  %v566_v42 = vld [vmem:[%s1841_s7 + $0x308] sm:$0xff] }
  0x94   :  { %v58_v16 = vpop.xlane.xlu0 %57 }
  0x95   :  { %v71_v19 = vrot.slane %v58_v16, %v70_v17  ;;  %v538_v16 = vld [vmem:[%s1841_s7 + $0x228] sm:$0xff] }
  0x98   :  { %v63_v18 = vpop.xlane.xlu0 %62 }
  0x99   :  { %v75_v21 = vrot.slane %v63_v18, %v70_v17  ;;  %v540_v17 = vld [vmem:[%s1841_s7 + $0x238] sm:$0xff] }
  0x9b   :  { %v77_v22 = vsel %vm76_vm3, %v75_v21, %v71_v19 }
  0x9c   :  { %v79_v23 = vadd.f32 %v77_v22, %v44_v20  ;;  %v473_v22 = vld [vmem:[%s1841_s7 + $0x20] sm:$0xff] }
  0x9e   :  { %81 = vst.msk [vmem:[#allocation2] sm:$0x3] %vm42_vm1, %v79_v23  ;;  %v475_v23 = vld [vmem:[%s1841_s7 + $0x30] sm:$0xff] }
  0x9f   :  { %v1002_v35 = vpack.c.bf16 %v475_v23, %v473_v22  ;;  %v493_v22 = vld [vmem:[%s1841_s7 + $0xc0] sm:$0xff]  ;;  %v495_v23 = vld [vmem:[%s1841_s7 + $0xd0] sm:$0xff] }
  0xa0   :  { %v1022_v32 = vpack.c.bf16 %v495_v23, %v493_v22  ;;  %v577_v23 = vld [vmem:[%s1841_s7 + $0x360] sm:$0xff] }
  0xa5   :  { %v85_v26 = vld [vmem:[#allocation2] sm:$0x3] }
  0xa6   :  { %v86_v28 = vmul.f32 0.00390625, %v85_v26  ;;  %v1000_v26 = vpack.c.bf16 %v476_v14, %v474_v13  ;;  %v553_v13 = vld [vmem:[%s1841_s7 + $0x2a0] sm:$0xff]  ;;  %v555_v14 = vld [vmem:[%s1841_s7 + $0x2b0] sm:$0xff] }
  0xa8   :  { %935 = vmatmul.mubr.msk.f32.vlgmr.msra.gmra.mrb[0].mxu0 %vm95_vm4, %v86_v28  ;;  %v537_v28 = vld [vmem:[%s1841_s7 + $0x220] sm:$0xff] }
  0xa9   :  { %974 = vmatpush3.bf16.msra.mxu0 %v973_v27  ;;  %969 = vmatprep.mubr.msk.f32.mxu0 %vm1171_vm2, %v1170_v10  ;;  %v1064_v27 = vpack.c.bf16 %v540_v17, %v538_v16  ;;  %v1066_v36 = vpack.c.bf16 %v539_v29, %v537_v28  ;;  %v494_v16 = vld [vmem:[%s1841_s7 + $0xc8] sm:$0xff]  ;;  %v496_v17 = vld [vmem:[%s1841_s7 + $0xd8] sm:$0xff] }
  0xaa   :  { %975 = vmatprep.subr.bf16.mxu0 %v1172_v12  ;;  %v498_v28 = vld [vmem:[%s1841_s7 + $0xe8] sm:$0xff]  ;;  %v500_v29 = vld [vmem:[%s1841_s7 + $0xf8] sm:$0xff] }
  0xad   :  { %977 = vmatpush3.bf16.msra.mxu0 %v976_v31 }
  0xae   :  { %978 = vmatprep.subr.bf16.mxu0 %v1172_v12 }
  0xb1   :  { %980 = vmatpush3.bf16.msra.mxu0 %v979_v34  ;;  %v544_v34 = vld [vmem:[%s1841_s7 + $0x258] sm:$0xff] }
  0xb2   :  { %981 = vmatprep.subr.bf16.mxu0 %v1172_v12 }
  0xb5   :  { %983 = vmatpush3.bf16.msra.mxu0 %v982_v37  ;;  %v477_v37 = vld [vmem:[%s1841_s7 + $0x40] sm:$0xff] }
  0xb6   :  { %984 = vmatprep.subr.bf16.mxu0 %v1172_v12  ;;  %v1006_v47 = vpack.c.bf16 %v479_v38, %v477_v37  ;;  %v561_v38 = vld [vmem:[%s1841_s7 + $0x2e0] sm:$0xff] }
  0xb9   :  { %986 = vmatpush3.bf16.msra.mxu0 %v985_v40  ;;  %v1068_v40 = vpack.c.bf16 %v544_v34, %v542_v33  ;;  %v497_v34 = vld [vmem:[%s1841_s7 + $0xe0] sm:$0xff] }
  0xba   :  { %987 = vmatprep.subr.bf16.mxu0 %v1172_v12 }
  0xbd   :  { %989 = vmatpush3.bf16.msra.mxu0 %v988_v43  ;;  %v482_v43 = vld [vmem:[%s1841_s7 + $0x68] sm:$0xff] }
  0xbe   :  { %990 = vmatprep.subr.bf16.mxu0 %v1172_v12 }
  0xc1   :  { %992 = vmatpush3.bf16.msra.mxu0 %v991_v46  ;;  %v548_v46 = vld [vmem:[%s1841_s7 + $0x278] sm:$0xff] }
  0xc2   :  { %993 = vmatprep.subr.bf16.mxu0 %v1172_v12  ;;  %v535_v12 = vld [vmem:[%s1841_s7 + $0x210] sm:$0xff] }
  0xc3   :  { %v1062_v21 = vpack.c.bf16 %v535_v12, %v533_v11 }
  0xc5   :  { %995 = vmatpush3.bf16.msra.mxu0 %v994_v49  ;;  %v481_v49 = vld [vmem:[%s1841_s7 + $0x60] sm:$0xff] }
  0xc6   :  { %874 = vmatprep.subr.msk.mxu0 %vm53_vm0, %v311_v57  ;;  %v550_v57 = vld [vmem:[%s1841_s7 + $0x288] sm:$0xff] }
  0xc7   :  { %v1076_v0 = vpack.c.bf16 %v552_v58, %v550_v57  ;;  %v505_v58 = vld [vmem:[%s1841_s7 + $0x120] sm:$0xff] }
 0x17b   :  { %v168_v51 = vpop.f32.mrb[0].mxu0 }
 0x17c   :  { %v169_v52 = vadd.f32 %v867_v50, %v168_v51  ;;  %v936_v53 = vpop.f32.mrb[1].mxu0  ;;  %v483_v50 = vld [vmem:[%s1841_s7 + $0x70] sm:$0xff]  ;;  %v1008_v51 = vpack.c.bf16 %v484_v44, %v482_v43  ;;  %v568_v43 = vld [vmem:[%s1841_s7 + $0x318] sm:$0xff] }
 0x17d   :  { %v545_v53 = vld [vmem:[%s1841_s7 + $0x260] sm:$0xff] }
 0x17e   :  { %v172_v54 = vmax.f32 %v169_v52, 0.0  ;;  %v1072_v52 = vpack.c.bf16 %v548_v46, %v546_v45  ;;  %v501_v46 = vld [vmem:[%s1841_s7 + $0x100] sm:$0xff] }
 0x180   :  { %970 = vmatmul.mubr.f32.vlgmr.msra.gmra.mrb[2].mxu0 %v172_v54  ;;  %v547_v54 = vld [vmem:[%s1841_s7 + $0x270] sm:$0xff] }
 0x181   :  { %458 = vmatprep.mubr.f32.mxu0 %v1170_v10  ;;  %875 = vmatpush1.msk.msra.mxu0 %vm53_vm0, %v285_v55  ;;  %v471_v10 = vld [vmem:[%s1841_s7 + $0x10] sm:$0xff]  ;;  %v486_v55 = vld [vmem:[%s1841_s7 + $0x88] sm:$0xff]  ;;  %v1074_v60 = vpack.c.bf16 %v547_v54, %v545_v53  ;;  %v508_v53 = vld [vmem:[%s1841_s7 + $0x138] sm:$0xff] }
 0x182   :  { %1061 = vmatprep.subr.bf16.mxu0 %v1060_v4  ;;  %v998_v20 = vpack.c.bf16 %v471_v10, %v469_v9  ;;  %v492_v4 = vld [vmem:[%s1841_s7 + $0xb8] sm:$0xff]  ;;  %v489_v9 = vld [vmem:[%s1841_s7 + $0xa0] sm:$0xff]  ;;  %v491_v10 = vld [vmem:[%s1841_s7 + $0xb0] sm:$0xff] }
 0x183   :  { %v570_v54 = vld [vmem:[%s1841_s7 + $0x328] sm:$0xff] }
 0x253   :  { %v262_v63 = vpop.f32.mrb[2].mxu0 }
 0x254   :  { %v263_v2 = vadd.f32 %v870_v59, %v262_v63  ;;  %v971_v3 = vpop.f32.mrb[3].mxu0  ;;  %v1010_v59 = vpack.c.bf16 %v483_v50, %v481_v49  ;;  %v1012_v63 = vpack.c.bf16 %v488_v56, %v486_v55  ;;  %v1092_v49 = vpack.c.bf16 %v568_v43, %v566_v42  ;;  %v565_v50 = vld [vmem:[%s1841_s7 + $0x300] sm:$0xff]  ;;  %v572_v55 = vld [vmem:[%s1841_s7 + $0x338] sm:$0xff] }
 0x255   :  { %v490_v3 = vld [vmem:[%s1841_s7 + $0xa8] sm:$0xff]  ;;  %v521_v43 = vld [vmem:[%s1841_s7 + $0x1a0] sm:$0xff] }
 0x256   :  { %v275_v5 = vrot.slane %v263_v2, 2  ;;  %v267_v6 = vrot.slane %v263_v2, 6  ;;  %v271_v7 = vrot.slane %v263_v2, 4  ;;  %v1016_v11 = vpack.c.bf16 %v492_v4, %v490_v3  ;;  %v576_v3 = vld [vmem:[%s1841_s7 + $0x358] sm:$0xff] }
 0x258   :  { %276 = vrot.lane.b32.xlu0 %v275_v5, %s1173_s4  ;;  %268 = vrot.lane.b32.xlu1 %v267_v6, %s1174_s24  ;;  %v554_v5 = vld [vmem:[%s1841_s7 + $0x2a8] sm:$0xff]  ;;  %v556_v6 = vld [vmem:[%s1841_s7 + $0x2b8] sm:$0xff] }
 0x259   :  { %v1080_v12 = vpack.c.bf16 %v556_v6, %v554_v5  ;;  %v509_v6 = vld [vmem:[%s1841_s7 + $0x140] sm:$0xff] }
 0x25c   :  { %272 = vrot.lane.b32.xlu1 %v271_v7, %s1175_s25  ;;  %v1014_v7 = vpack.c.bf16 %v487_v62, %v485_v61  ;;  %v1096_v61 = vpack.c.bf16 %v572_v55, %v570_v54  ;;  %v569_v62 = vld [vmem:[%s1841_s7 + $0x320] sm:$0xff] }
 0x2ca   :  { %v269_v8 = vpop.permute.xlu1 %268  ;;  %v277_v24 = vpop.permute.xlu0 %276 }
 0x2cb   :  { %v280_v18 = vsel %vm279_vm5, %v263_v2, %v269_v8  ;;  %v551_v2 = vld [vmem:[%s1841_s7 + $0x290] sm:$0xff] }
 0x2cc   :  { %v1078_v8 = vpack.c.bf16 %v551_v2, %v549_v1  ;;  %v512_v1 = vld [vmem:[%s1841_s7 + $0x158] sm:$0xff]  ;;  %v574_v2 = vld [vmem:[%s1841_s7 + $0x348] sm:$0xff] }
 0x2ce   :  { %v273_v19 = vpop.permute.xlu1 %272 }
 0x2cf   :  { %v281_v25 = vsel %vm53_vm0, %v280_v18, %v273_v19  ;;  %v558_v18 = vld [vmem:[%s1841_s7 + $0x2c8] sm:$0xff]  ;;  %v560_v19 = vld [vmem:[%s1841_s7 + $0x2d8] sm:$0xff] }
 0x2d0   :  { %v283_v31 = vsel %vm282_vm6, %v281_v25, %v277_v24  ;;  %v1020_v24 = vpack.c.bf16 %v496_v17, %v494_v16  ;;  %v1084_v25 = vpack.c.bf16 %v560_v19, %v558_v18  ;;  %v580_v16 = vld [vmem:[%s1841_s7 + $0x378] sm:$0xff]  ;;  %v513_v19 = vld [vmem:[%s1841_s7 + $0x160] sm:$0xff] }
 0x2d1   :  { %873 = vmatmul.mubr.msk.f32.vlgmr.msra.gmra.mrb[0].mxu1 %vm95_vm4, %v283_v31  ;;  %876 = vmatmul.mubr.msk.f32.vlgmr.msra.gmra.mrb[4].mxu0 %vm95_vm4, %v283_v31  ;;  %v564_v31 = vld [vmem:[%s1841_s7 + $0x2f8] sm:$0xff] }
 0x2d2   :  { %999 = vmatpush1.bf16.msra.mxu1 %v998_v20  ;;  %1063 = vmatpush1.bf16.msra.mxu0 %v1062_v21  ;;  %v1018_v20 = vpack.c.bf16 %v491_v10, %v489_v9  ;;  %v1082_v21 = vpack.c.bf16 %v555_v14, %v553_v13  ;;  %v1088_v37 = vpack.c.bf16 %v564_v31, %v562_v30  ;;  %v573_v10 = vld [vmem:[%s1841_s7 + $0x340] sm:$0xff]  ;;  %v516_v13 = vld [vmem:[%s1841_s7 + $0x178] sm:$0xff]  ;;  %v578_v14 = vld [vmem:[%s1841_s7 + $0x368] sm:$0xff] }
 0x2d3   :  { %1001 = vmatprep.subr.bf16.mxu1 %v1000_v26  ;;  %1065 = vmatprep.subr.bf16.mxu0 %v1064_v27  ;;  %v557_v26 = vld [vmem:[%s1841_s7 + $0x2c0] sm:$0xff]  ;;  %v559_v27 = vld [vmem:[%s1841_s7 + $0x2d0] sm:$0xff]  ;;  %v1100_v9 = vpack.c.bf16 %v576_v3, %v574_v2  ;;  %v1104_v22 = vpack.c.bf16 %v580_v16, %v578_v14  ;;  %v596_v3 = vld [vmem:[%s1841_s7 + $0x3f8] sm:$0xff]  ;;  %v290_v14 = vsub.s32 0, %v1256_v15  ;;  %v298_v16 = vsub.s32 2, %v1256_v15 }
 0x2d4   :  { %v1086_v33 = vpack.c.bf16 %v559_v27, %v557_v26  ;;  %v520_v26 = vld [vmem:[%s1841_s7 + $0x198] sm:$0xff]  ;;  %v582_v27 = vld [vmem:[%s1841_s7 + $0x388] sm:$0xff]  ;;  %v517_v31 = vld [vmem:[%s1841_s7 + $0x180] sm:$0xff] }
 0x2d6   :  { %1003 = vmatpush1.bf16.msra.mxu1 %v1002_v35  ;;  %1067 = vmatpush1.bf16.msra.mxu0 %v1066_v36  ;;  %v499_v35 = vld [vmem:[%s1841_s7 + $0xf0] sm:$0xff]  ;;  %v1024_v36 = vpack.c.bf16 %v500_v29, %v498_v28  ;;  %v584_v28 = vld [vmem:[%s1841_s7 + $0x398] sm:$0xff] }
 0x2d7   :  { %1005 = vmatprep.subr.bf16.mxu1 %v1004_v39  ;;  %1069 = vmatprep.subr.bf16.mxu0 %v1068_v40  ;;  %v563_v39 = vld [vmem:[%s1841_s7 + $0x2f0] sm:$0xff]  ;;  %v502_v40 = vld [vmem:[%s1841_s7 + $0x108] sm:$0xff]  ;;  %v1026_v44 = vpack.c.bf16 %v499_v35, %v497_v34  ;;  %v1108_v34 = vpack.c.bf16 %v584_v28, %v582_v27  ;;  %v581_v35 = vld [vmem:[%s1841_s7 + $0x380] sm:$0xff] }
 0x2d8   :  { %v1090_v45 = vpack.c.bf16 %v563_v39, %v561_v38  ;;  %v524_v38 = vld [vmem:[%s1841_s7 + $0x1b8] sm:$0xff]  ;;  %v586_v39 = vld [vmem:[%s1841_s7 + $0x3a8] sm:$0xff] }
 0x2da   :  { %1007 = vmatpush1.bf16.msra.mxu1 %v1006_v47  ;;  %1071 = vmatpush1.bf16.msra.mxu0 %v1070_v48  ;;  %v503_v47 = vld [vmem:[%s1841_s7 + $0x110] sm:$0xff]  ;;  %v1028_v48 = vpack.c.bf16 %v504_v41, %v502_v40  ;;  %v588_v40 = vld [vmem:[%s1841_s7 + $0x3b8] sm:$0xff] }
 0x2db   :  { %1009 = vmatprep.subr.bf16.mxu1 %v1008_v51  ;;  %1073 = vmatprep.subr.bf16.mxu0 %v1072_v52  ;;  %v567_v51 = vld [vmem:[%s1841_s7 + $0x310] sm:$0xff]  ;;  %v506_v52 = vld [vmem:[%s1841_s7 + $0x128] sm:$0xff]  ;;  %v1030_v56 = vpack.c.bf16 %v503_v47, %v501_v46  ;;  %v1112_v46 = vpack.c.bf16 %v588_v40, %v586_v39  ;;  %v585_v47 = vld [vmem:[%s1841_s7 + $0x3a0] sm:$0xff] }
 0x2dc   :  { %v1094_v57 = vpack.c.bf16 %v567_v51, %v565_v50  ;;  %v528_v50 = vld [vmem:[%s1841_s7 + $0x1d8] sm:$0xff]  ;;  %v590_v51 = vld [vmem:[%s1841_s7 + $0x3c8] sm:$0xff] }
 0x2de   :  { %1011 = vmatpush1.bf16.msra.mxu1 %v1010_v59  ;;  %1075 = vmatpush1.bf16.msra.mxu0 %v1074_v60  ;;  %v507_v59 = vld [vmem:[%s1841_s7 + $0x130] sm:$0xff]  ;;  %v1032_v60 = vpack.c.bf16 %v508_v53, %v506_v52  ;;  %v592_v52 = vld [vmem:[%s1841_s7 + $0x3d8] sm:$0xff] }
 0x2df   :  { %1013 = vmatprep.subr.bf16.mxu1 %v1012_v63  ;;  %1077 = vmatprep.subr.bf16.mxu0 %v1076_v0  ;;  %v571_v63 = vld [vmem:[%s1841_s7 + $0x330] sm:$0xff]  ;;  %v510_v0 = vld [vmem:[%s1841_s7 + $0x148] sm:$0xff]  ;;  %v1034_v4 = vpack.c.bf16 %v507_v59, %v505_v58  ;;  %v589_v59 = vld [vmem:[%s1841_s7 + $0x3c0] sm:$0xff] }
 0x2e0   :  { %v1098_v5 = vpack.c.bf16 %v571_v63, %v569_v62  ;;  %v527_v58 = vld [vmem:[%s1841_s7 + $0x1d0] sm:$0xff]  ;;  %v530_v63 = vld [vmem:[%s1841_s7 + $0x1e8] sm:$0xff] }
 0x2e2   :  { %1015 = vmatpush1.bf16.msra.mxu1 %v1014_v7  ;;  %1079 = vmatpush1.bf16.msra.mxu0 %v1078_v8  ;;  %v511_v7 = vld [vmem:[%s1841_s7 + $0x150] sm:$0xff]  ;;  %v1036_v8 = vpack.c.bf16 %v512_v1, %v510_v0  ;;  %v532_v0 = vld [vmem:[%s1841_s7 + $0x1f8] sm:$0xff]  ;;  %v594_v1 = vld [vmem:[%s1841_s7 + $0x3e8] sm:$0xff] }
 0x2e3   :  { %1017 = vmatprep.subr.bf16.mxu1 %v1016_v11  ;;  %1081 = vmatprep.subr.bf16.mxu0 %v1080_v12  ;;  %v575_v11 = vld [vmem:[%s1841_s7 + $0x350] sm:$0xff]  ;;  %v514_v12 = vld [vmem:[%s1841_s7 + $0x168] sm:$0xff]  ;;  %v1038_v17 = vpack.c.bf16 %v511_v7, %v509_v6  ;;  %v1056_v2 = vpack.c.bf16 %v532_v0, %v530_v63  ;;  %v1120_v6 = vpack.c.bf16 %v596_v3, %v594_v1  ;;  %v780_v63 = vld [vmem:[%s1842_s9 + $0xd8] sm:$0xff] }
 0x2e4   :  { %v1102_v18 = vpack.c.bf16 %v575_v11, %v573_v10  ;;  %v769_v11 = vld [vmem:[%s1842_s9 + $0x80] sm:$0xff]  ;;  %v764_v3 = vld [vmem:[%s1842_s9 + $0x58] sm:$0xff] }
 0x2e6   :  { %1019 = vmatpush1.bf16.msra.mxu1 %v1018_v20  ;;  %1083 = vmatpush1.bf16.msra.mxu0 %v1082_v21  ;;  %v515_v20 = vld [vmem:[%s1841_s7 + $0x170] sm:$0xff]  ;;  %v1040_v21 = vpack.c.bf16 %v516_v13, %v514_v12  ;;  %v770_v12 = vld [vmem:[%s1842_s9 + $0x88] sm:$0xff] }
 0x2e7   :  { %1021 = vmatprep.subr.bf16.mxu1 %v1020_v24  ;;  %1085 = vmatprep.subr.bf16.mxu0 %v1084_v25  ;;  %v579_v24 = vld [vmem:[%s1841_s7 + $0x370] sm:$0xff]  ;;  %v518_v25 = vld [vmem:[%s1841_s7 + $0x188] sm:$0xff]  ;;  %v1042_v29 = vpack.c.bf16 %v515_v20, %v513_v19  ;;  %v1124_v13 = vpack.c.bf16 %v770_v12, %v769_v11  ;;  %v302_v19 = vsub.s32 3, %v1256_v15  ;;  %v784_v12 = vld [vmem:[%s1842_s9 + $0xf8] sm:$0xff] }
 0x2e8   :  { %v1106_v30 = vpack.c.bf16 %v579_v24, %v577_v23  ;;  %v783_v11 = vld [vmem:[%s1842_s9 + $0xf0] sm:$0xff] }
 0x2ea   :  { %1023 = vmatpush1.bf16.msra.mxu1 %v1022_v32  ;;  %1087 = vmatpush1.bf16.msra.mxu0 %v1086_v33  ;;  %v519_v32 = vld [vmem:[%s1841_s7 + $0x190] sm:$0xff]  ;;  %v1044_v33 = vpack.c.bf16 %v520_v26, %v518_v25 }
 0x2eb   :  { %1025 = vmatprep.subr.bf16.mxu1 %v1024_v36  ;;  %1089 = vmatprep.subr.bf16.mxu0 %v1088_v37  ;;  %v583_v36 = vld [vmem:[%s1841_s7 + $0x390] sm:$0xff]  ;;  %v522_v37 = vld [vmem:[%s1841_s7 + $0x1a8] sm:$0xff]  ;;  %v1046_v41 = vpack.c.bf16 %v519_v32, %v517_v31 }
 0x2ec   :  { %v1110_v42 = vpack.c.bf16 %v583_v36, %v581_v35  ;;  %v754_v31 = vld [vmem:[%s1842_s9 + $0x8] sm:$0xff]  ;;  %v772_v35 = vld [vmem:[%s1842_s9 + $0x98] sm:$0xff] }
 0x2ee   :  { %1027 = vmatpush1.bf16.msra.mxu1 %v1026_v44  ;;  %1091 = vmatpush1.bf16.msra.mxu0 %v1090_v45  ;;  %v523_v44 = vld [vmem:[%s1841_s7 + $0x1b0] sm:$0xff]  ;;  %v1048_v45 = vpack.c.bf16 %v524_v38, %v522_v37 }
 0x2ef   :  { %1029 = vmatprep.subr.bf16.mxu1 %v1028_v48  ;;  %1093 = vmatprep.subr.bf16.mxu0 %v1092_v49  ;;  %v587_v48 = vld [vmem:[%s1841_s7 + $0x3b0] sm:$0xff]  ;;  %v526_v49 = vld [vmem:[%s1841_s7 + $0x1c8] sm:$0xff]  ;;  %v1050_v53 = vpack.c.bf16 %v523_v44, %v521_v43  ;;  %v756_v43 = vld [vmem:[%s1842_s9 + $0x18] sm:$0xff] }
 0x2f0   :  { %v1114_v54 = vpack.c.bf16 %v587_v48, %v585_v47  ;;  %v1052_v55 = vpack.c.bf16 %v528_v50, %v526_v49  ;;  %v773_v44 = vld [vmem:[%s1842_s9 + $0xa0] sm:$0xff]  ;;  %v758_v49 = vld [vmem:[%s1842_s9 + $0x28] sm:$0xff]  ;;  %v775_v50 = vld [vmem:[%s1842_s9 + $0xb0] sm:$0xff] }
 0x2f1   :  { %v757_v48 = vld [vmem:[%s1842_s9 + $0x20] sm:$0xff] }
 0x2f2   :  { %1031 = vmatpush1.bf16.msra.mxu1 %v1030_v56  ;;  %1095 = vmatpush1.bf16.msra.mxu0 %v1094_v57  ;;  %v1116_v56 = vpack.c.bf16 %v592_v52, %v590_v51  ;;  %v525_v57 = vld [vmem:[%s1841_s7 + $0x1c0] sm:$0xff]  ;;  %v776_v51 = vld [vmem:[%s1842_s9 + $0xb8] sm:$0xff]  ;;  %v1134_v52 = vpack.c.bf16 %v758_v49, %v757_v48 }
 0x2f3   :  { %1033 = vmatprep.subr.bf16.mxu1 %v1032_v60  ;;  %1097 = vmatprep.subr.bf16.mxu0 %v1096_v61  ;;  %v1054_v60 = vpack.c.bf16 %v527_v58, %v525_v57  ;;  %v591_v61 = vld [vmem:[%s1841_s7 + $0x3d0] sm:$0xff]  ;;  %v778_v57 = vld [vmem:[%s1842_s9 + $0xc8] sm:$0xff] }
 0x2f4   :  { %v1118_v62 = vpack.c.bf16 %v591_v61, %v589_v59  ;;  %v762_v61 = vld [vmem:[%s1842_s9 + $0x48] sm:$0xff] }
 0x2f6   :  { %1035 = vmatpush1.bf16.msra.mxu1 %v1034_v4  ;;  %1099 = vmatpush1.bf16.msra.mxu0 %v1098_v5  ;;  %v529_v4 = vld [vmem:[%s1841_s7 + $0x1e0] sm:$0xff]  ;;  %v531_v5 = vld [vmem:[%s1841_s7 + $0x1f0] sm:$0xff] }
 0x2f7   :  { %1037 = vmatprep.subr.bf16.mxu1 %v1036_v8  ;;  %1101 = vmatprep.subr.bf16.mxu0 %v1100_v9  ;;  %v1058_v7 = vpack.c.bf16 %v531_v5, %v529_v4  ;;  %v593_v8 = vld [vmem:[%s1841_s7 + $0x3e0] sm:$0xff]  ;;  %v595_v9 = vld [vmem:[%s1841_s7 + $0x3f0] sm:$0xff] }
 0x2f8   :  { %v1122_v10 = vpack.c.bf16 %v595_v9, %v593_v8  ;;  %v781_v5 = vld [vmem:[%s1842_s9 + $0xe0] sm:$0xff]  ;;  %v766_v9 = vld [vmem:[%s1842_s9 + $0x68] sm:$0xff] }
 0x2f9   :  { %v765_v8 = vld [vmem:[%s1842_s9 + $0x60] sm:$0xff] }
 0x2fa   :  { %1039 = vmatpush1.bf16.msra.mxu1 %v1038_v17  ;;  %1103 = vmatpush1.bf16.msra.mxu0 %v1102_v18  ;;  %v286_v17 = vld [vmem:[%s1843_s6] sm:$0xf]  ;;  %v294_v18 = vsub.s32 1, %v1256_v15 }
 0x2fb   :  { %1041 = vmatprep.subr.bf16.mxu1 %v1040_v21  ;;  %1105 = vmatprep.subr.bf16.mxu0 %v1104_v22  ;;  %v291_v20 = vrot.slane %v286_v17, %v290_v14  ;;  %v299_v21 = vrot.slane %v286_v17, %v298_v16  ;;  %v303_v23 = vrot.slane %v286_v17, %v302_v19  ;;  %v767_v16 = vld [vmem:[%s1842_s9 + $0x70] sm:$0xff] }
 0x2fc   :  { %v295_v22 = vrot.slane %v286_v17, %v294_v18  ;;  %v768_v17 = vld [vmem:[%s1842_s9 + $0x78] sm:$0xff] }
 0x2fd   :  { %v1154_v19 = vpack.c.bf16 %v768_v17, %v767_v16 }
 0x2fe   :  { %1043 = vmatpush1.bf16.msra.mxu1 %v1042_v29  ;;  %1107 = vmatpush1.bf16.msra.mxu0 %v1106_v30  ;;  %v753_v30 = vld [vmem:[%s1842_s9] sm:$0xff] }
 0x2ff   :  { %1045 = vmatprep.subr.bf16.mxu1 %v1044_v33  ;;  %1109 = vmatprep.subr.bf16.mxu0 %v1108_v34  ;;  %v771_v34 = vld [vmem:[%s1842_s9 + $0x90] sm:$0xff]  ;;  %v1126_v38 = vpack.c.bf16 %v754_v31, %v753_v30 }
 0x302   :  { %1047 = vmatpush1.bf16.msra.mxu1 %v1046_v41  ;;  %1111 = vmatpush1.bf16.msra.mxu0 %v1110_v42  ;;  %v1128_v41 = vpack.c.bf16 %v772_v35, %v771_v34  ;;  %v755_v42 = vld [vmem:[%s1842_s9 + $0x10] sm:$0xff] }
 0x303   :  { %1049 = vmatprep.subr.bf16.mxu1 %v1048_v45  ;;  %1113 = vmatprep.subr.bf16.mxu0 %v1112_v46  ;;  %v774_v45 = vld [vmem:[%s1842_s9 + $0xa8] sm:$0xff]  ;;  %v1130_v46 = vpack.c.bf16 %v756_v43, %v755_v42 }
 0x304   :  { %v1132_v47 = vpack.c.bf16 %v774_v45, %v773_v44 }
 0x306   :  { %1051 = vmatpush1.bf16.msra.mxu1 %v1050_v53  ;;  %1115 = vmatpush1.bf16.msra.mxu0 %v1114_v54  ;;  %v1136_v53 = vpack.c.bf16 %v776_v51, %v775_v50  ;;  %v759_v54 = vld [vmem:[%s1842_s9 + $0x30] sm:$0xff] }
 0x307   :  { %1053 = vmatprep.subr.bf16.mxu1 %v1052_v55  ;;  %1117 = vmatprep.subr.bf16.mxu0 %v1116_v56  ;;  %v760_v55 = vld [vmem:[%s1842_s9 + $0x38] sm:$0xff]  ;;  %v777_v56 = vld [vmem:[%s1842_s9 + $0xc0] sm:$0xff] }
 0x308   :  { %v1138_v58 = vpack.c.bf16 %v760_v55, %v759_v54  ;;  %v1140_v59 = vpack.c.bf16 %v778_v57, %v777_v56 }
 0x30a   :  { %1055 = vmatpush1.bf16.msra.mxu1 %v1054_v60  ;;  %1119 = vmatpush1.bf16.msra.mxu0 %v1118_v62  ;;  %v761_v60 = vld [vmem:[%s1842_s9 + $0x40] sm:$0xff]  ;;  %v779_v62 = vld [vmem:[%s1842_s9 + $0xd0] sm:$0xff] }
 0x30b   :  { %1057 = vmatprep.subr.bf16.mxu1 %v1056_v2  ;;  %1121 = vmatprep.subr.bf16.mxu0 %v1120_v6  ;;  %v1142_v0 = vpack.c.bf16 %v762_v61, %v761_v60  ;;  %v1144_v1 = vpack.c.bf16 %v780_v63, %v779_v62  ;;  %v763_v2 = vld [vmem:[%s1842_s9 + $0x50] sm:$0xff]  ;;  %v782_v6 = vld [vmem:[%s1842_s9 + $0xe8] sm:$0xff] }
 0x30c   :  { %v1146_v4 = vpack.c.bf16 %v764_v3, %v763_v2 }
 0x30e   :  { %1059 = vmatpush1.bf16.msra.mxu1 %v1058_v7  ;;  %1123 = vmatpush1.bf16.msra.mxu0 %v1122_v10  ;;  %v1148_v7 = vpack.c.bf16 %v782_v6, %v781_v5  ;;  %v1150_v10 = vpack.c.bf16 %v766_v9, %v765_v8 }
 0x30f   :  { %1125 = vmatprep.subr.bf16.mxu1 %v1124_v13  ;;  %v1152_v13 = vpack.c.bf16 %v784_v12, %v783_v11 }
 0x3a4   :  { %v389_v24 = vpop.f32.mrb[0].mxu1  ;;  %v460_v25 = vpop.f32.mrb[4].mxu0 }
 0x3a5   :  { %v390_v26 = vadd.f32 %v389_v24, %v291_v20  ;;  %v461_v27 = vadd.f32 %v460_v25, %v299_v21  ;;  %v391_v28 = vpop.f32.mrb[1].mxu1  ;;  %v462_v29 = vpop.f32.mrb[5].mxu0  ;;  %v597_v20 = vld [vmem:[%s1844_s8] sm:$0x3] }
 0x3a6   :  { %v392_v32 = vadd.f32 %v391_v28, %v295_v22  ;;  %v463_v33 = vadd.f32 %v462_v29, %v303_v23  ;;  %v602_v21 = vrot.slane %v597_v20, %v290_v14  ;;  %v606_v22 = vrot.slane %v597_v20, %v294_v18  ;;  %v877_v14 = vld [vmem:[%s1845_s10] ss:$0 sm:$0xff] }
 0x3a7   :  { %v465_v39 = vmax.f32 %v390_v26, 0.0  ;;  %v467_v40 = vmax.f32 %v461_v27, 0.0 }
 0x3a8   :  { %v466_v36 = vmax.f32 %v392_v32, 0.0  ;;  %v468_v37 = vmax.f32 %v463_v33, 0.0 }
 0x3aa   :  { %673 = vmatprep.mubr.f32.mxu1 %v466_v36  ;;  %744 = vmatprep.mubr.f32.mxu0 %v468_v37 }
 0x3ab   :  { %674 = vmatmul.mubr.f32.vlgmr.msra.gmra.mrb[2].mxu1 %v465_v39  ;;  %745 = vmatmul.mubr.f32.vlgmr.msra.gmra.mrb[6].mxu0 %v467_v40 }
 0x3ac   :  { %1127 = vmatpush3.bf16.msra.mxu1 %v1126_v38 }
 0x3ad   :  { %1129 = vmatprep.subr.bf16.mxu1 %v1128_v41 }
 0x3b0   :  { %1131 = vmatpush3.bf16.msra.mxu1 %v1130_v46 }
 0x3b1   :  { %1133 = vmatprep.subr.bf16.mxu1 %v1132_v47 }
 0x3b4   :  { %1135 = vmatpush3.bf16.msra.mxu1 %v1134_v52 }
 0x3b5   :  { %1137 = vmatprep.subr.bf16.mxu1 %v1136_v53 }
 0x3b8   :  { %1139 = vmatpush3.bf16.msra.mxu1 %v1138_v58 }
 0x3b9   :  { %1141 = vmatprep.subr.bf16.mxu1 %v1140_v59 }
 0x3bc   :  { %1143 = vmatpush3.bf16.msra.mxu1 %v1142_v0 }
 0x3bd   :  { %1145 = vmatprep.subr.bf16.mxu1 %v1144_v1 }
 0x3c0   :  { %1147 = vmatpush3.bf16.msra.mxu1 %v1146_v4 }
 0x3c1   :  { %1149 = vmatprep.subr.bf16.mxu1 %v1148_v7 }
 0x3c4   :  { %1151 = vmatpush3.bf16.msra.mxu1 %v1150_v10 }
 0x3c5   :  { %1153 = vmatprep.subr.bf16.mxu1 %v1152_v13 }
 0x3c8   :  { %1155 = vmatpush3.bf16.msra.mxu1 %v1154_v19 }
 0x47e   :  { %v675_v23 = vpop.f32.mrb[2].mxu1  ;;  %v746_v24 = vpop.f32.mrb[6].mxu0 }
 0x47f   :  { %v676_v25 = vadd.f32 %v675_v23, %v602_v21  ;;  %v677_v26 = vpop.f32.mrb[3].mxu1  ;;  %v748_v27 = vpop.f32.mrb[7].mxu0 }
 0x480   :  { %v678_v28 = vadd.f32 %v677_v26, %v606_v22 }
 0x481   :  { %v747_v29 = vadd.f32 %v746_v24, %v676_v25 }
 0x482   :  { %v749_v30 = vadd.f32 %v748_v27, %v678_v28 }
 0x483   :  { %v751_v32 = vmax.f32 %v747_v29, 0.0 }
 0x484   :  { %v752_v31 = vmax.f32 %v749_v30, 0.0 }
 0x486   :  { %856 = vmatprep.mubr.f32.mxu1 %v752_v31 }
 0x487   :  { %857 = vmatmul.mubr.f32.vlgmr.msra.gmra.mrb[4].mxu1 %v751_v32 }
 0x55a   :  { %v929_v33 = vpop.f32.mrb[4].mxu1 }
 0x55b   :  { %v930_v34 = vpop.f32.mrb[5].mxu1 }
 0x55c   :  { %v931_v15 = vadd.f32 %v930_v34, %v929_v33 }
 0x55e   :  { %v859_v18 = vadd.f32 %v931_v15, %v877_v14 }
 0x560   :  { %862 = vst [vmem:[%s1846_s11] sm:$0xff] %v859_v18 }

</bundles_post_ra>
